<compile_context>
chip_gen: v6e
topology: v6e:2x2x1
jax: 0.10.0
libtpu: 0.0.40
codegen_flags: <defaults>
</compile_context>

<pallas_src>
import jax
import jax.numpy as jnp
from jax import lax
from jax.experimental import pallas as pl
from jax.experimental.pallas import tpu as pltpu


def _round_up(x, m):
    return ((x + m - 1) // m) * m


def gru_lang_kernel(x_ref, len_ref, wih_ref, whh_ref, bih_ref, bhh_ref,
                    emb_ref, gi_ref):
    """One grid step == one independent batch block of Bb rows.

    x_ref:   (T*Bb, Ep)  time-major, rows grouped by timestep (matmul dtype)
    len_ref: (Bb, 1)     int32 sequence lengths
    wih_ref: (Ep, 3Hp)   W_ih^T (per-gate 128-aligned columns)
    whh_ref: (Hp, 3Hp)   W_hh^T
    bih/bhh: (1, 3Hp)    f32 biases
    emb_ref: (Bb, Hp)    output: hidden state at each row's last valid step
    gi_ref:  (T*Bb, 3Hp) f32 VMEM scratch for the hoisted input projection
    """
    TB, _ = x_ref.shape
    Hp = whh_ref.shape[0]
    Bb = len_ref.shape[0]
    T = TB // Bb

    # ---- pre-pass: hoisted input projection, one big MXU GEMM ----
    gi_ref[...] = (jnp.dot(x_ref[...], wih_ref[...],
                           preferred_element_type=jnp.float32)
                   + bih_ref[...])

    lens = len_ref[...]          # (Bb, 1) int32
    whh = whh_ref[...]           # (Hp, 3Hp)
    bhh = bhh_ref[...]           # (1, 3Hp) f32

    # PyTorch GRU gate math (gates stay f32; only the matmul may be bf16):
    #   r = sigmoid(gi_r + gh_r); z = sigmoid(gi_z + gh_z)
    #   n = tanh(gi_n + r * gh_n); h' = (1 - z) * n + z * h
    def step(t, h):
        row0 = pl.multiple_of(t * Bb, Bb)
        gi = gi_ref[pl.ds(row0, Bb), :]                      # (Bb, 3Hp) f32
        gh = jnp.dot(h.astype(whh.dtype), whh,
                     preferred_element_type=jnp.float32) + bhh
        r = jax.nn.sigmoid(gi[:, 0:Hp] + gh[:, 0:Hp])
        z = jax.nn.sigmoid(gi[:, Hp:2 * Hp] + gh[:, Hp:2 * Hp])
        n = jnp.tanh(gi[:, 2 * Hp:3 * Hp] + r * gh[:, 2 * Hp:3 * Hp])
        h_new = (1.0 - z) * n + z * h
        # pack_padded_sequence semantics: freeze rows whose length <= t, so the
        # final h equals the hidden state at each sequence's last valid step.
        return jnp.where(t < lens, h_new, h)

    h_last = lax.fori_loop(0, T, step, jnp.zeros((Bb, Hp), jnp.float32))
    emb_ref[...] = h_last.astype(emb_ref.dtype)


def lang_module_forward(word_embs, lang_len, params, *,
                        matmul_dtype=jnp.float32):
    """word_embs: (B, T, E) f32, lang_len: (B,) int.

    Returns (lang_emb (B, H), lang_scores (B, C)) matching LangModule.forward
    ('lang_emb' / 'lang_scores') for the unidirectional GRU with classifier.
    Set matmul_dtype=jnp.bfloat16 on v6e/v7x for MXU-native weights/inputs
    (f32 accumulation and f32 gate math are kept).
    """
    B, T, E = word_embs.shape
    H = params["w_hh_t"].shape[0]

    # ---- hardware-friendly padded sizes (lane=128, sublane=8) ----
    Ep = _round_up(E, 128)
    Hp = _round_up(H, 128)
    if B > 8:
        Bp = _round_up(B, 16)
        n_blocks = 2            # feeds both TensorCores on v7x (parallel grid)
    else:
        Bp = 8
        n_blocks = 1
    Bb = Bp // n_blocks

    # Time-major, zero-padded embeddings, rows grouped per batch block:
    # (B,T,E) -> (T,Bp,Ep) -> (n_blocks, T*Bb, Ep).  Zero padding is exact:
    # padded E columns hit zero weight rows; padded batch rows have length 0.
    x = jnp.transpose(word_embs, (1, 0, 2))
    x = jnp.pad(x, ((0, 0), (0, Bp - B), (0, Ep - E)))
    x = (x.reshape(T, n_blocks, Bb, Ep)
          .transpose(1, 0, 2, 3)
          .reshape(n_blocks, T * Bb, Ep)
          .astype(matmul_dtype))

    lens = jnp.pad(lang_len.astype(jnp.int32), (0, Bp - B)).reshape(Bp, 1)

    # Per-gate padding of the fused (.,3H) GRU weights/biases so each gate's
    # block starts at a 128-aligned lane offset g*Hp.
    def pad_gates_cols(w, rows_to, dtype):
        rows = w.shape[0]
        out = jnp.zeros((rows_to, 3 * Hp), dtype)
        for g in range(3):
            out = out.at[:rows, g * Hp:g * Hp + H].set(
                w[:, g * H:(g + 1) * H].astype(dtype))
        return out

    w_ih = pad_gates_cols(params["w_ih_t"], Ep, matmul_dtype)   # (Ep, 3Hp)
    w_hh = pad_gates_cols(params["w_hh_t"], Hp, matmul_dtype)   # (Hp, 3Hp)
    b_ih = pad_gates_cols(params["b_ih"], 1, jnp.float32)       # (1, 3Hp)
    b_hh = pad_gates_cols(params["b_hh"], 1, jnp.float32)       # (1, 3Hp)

    grid_spec = pltpu.PrefetchScalarGridSpec(
        num_scalar_prefetch=0,
        grid=(n_blocks,),
        in_specs=[
            pl.BlockSpec((pl.Squeezed(), T * Bb, Ep), lambda b: (b, 0, 0)),
            pl.BlockSpec((Bb, 1), lambda b: (b, 0)),            # lengths
            pl.BlockSpec((Ep, 3 * Hp), lambda b: (0, 0)),       # W_ih^T
            pl.BlockSpec((Hp, 3 * Hp), lambda b: (0, 0)),       # W_hh^T
            pl.BlockSpec((1, 3 * Hp), lambda b: (0, 0)),        # b_ih
            pl.BlockSpec((1, 3 * Hp), lambda b: (0, 0)),        # b_hh
        ],
        out_specs=pl.BlockSpec((Bb, Hp), lambda b: (b, 0)),     # lang_emb
        scratch_shapes=[pltpu.VMEM((T * Bb, 3 * Hp), jnp.float32)],  # gi
    )

    lang_emb_p = pl.pallas_call(
        gru_lang_kernel,
        out_shape=jax.ShapeDtypeStruct((Bp, Hp), jnp.float32),
        grid_spec=grid_spec,
        compiler_params=pltpu.CompilerParams(
            dimension_semantics=("parallel",)),   # batch blocks independent
    )(x, lens, w_ih, w_hh, b_ih, b_hh)

    lang_emb = lang_emb_p[:B, :H]

    # lang_cls = Linear(H -> C) + Dropout: runs once, tiny -> plain XLA so its
    # weights never sit (double-buffered) in VMEM during the recurrence.
    # TODO(synk): training-mode dropout not implemented (identity at inference).
    lang_scores = lang_emb @ params["w_cls_t"] + params["b_cls"]
    return lang_emb, lang_scores


def ref_forward(word_embs, lang_len, p):
    """Pure-JAX reference of the same math (length-masked GRU + linear)."""
    B, T, E = word_embs.shape
    H = p["w_hh_t"].shape[0]
    h = jnp.zeros((B, H), jnp.float32)
    for t in range(T):
        x_t = word_embs[:, t, :]
        gi = x_t @ p["w_ih_t"] + p["b_ih"]
        gh = h @ p["w_hh_t"] + p["b_hh"]
        r = jax.nn.sigmoid(gi[:, :H] + gh[:, :H])
        z = jax.nn.sigmoid(gi[:, H:2 * H] + gh[:, H:2 * H])
        n = jnp.tanh(gi[:, 2 * H:] + r * gh[:, 2 * H:])
        h_new = (1.0 - z) * n + z * h
        h = jnp.where((t < lang_len)[:, None], h_new, h)
    scores = h @ p["w_cls_t"] + p["b_cls"]
    return h, scores


def init_params(key, emb_size, hidden_size, num_text_classes):
    """Deterministic init mirroring nn.GRU / nn.Linear shapes (transposed)."""
    ks = jax.random.split(key, 6)
    k_gru = 1.0 / jnp.sqrt(hidden_size)
    k_cls = 1.0 / jnp.sqrt(hidden_size)
    u = lambda k, shape, bound: jax.random.uniform(
        k, shape, jnp.float32, minval=-bound, maxval=bound)
    return {
        # nn.GRU: weight_ih_l0 (3H, E) -> stored transposed (E, 3H)
        "w_ih_t": u(ks[0], (emb_size, 3 * hidden_size), k_gru),
        # nn.GRU: weight_hh_l0 (3H, H) -> stored transposed (H, 3H)
        "w_hh_t": u(ks[1], (hidden_size, 3 * hidden_size), k_gru),
        "b_ih": u(ks[2], (1, 3 * hidden_size), k_gru),
        "b_hh": u(ks[3], (1, 3 * hidden_size), k_gru),
        # nn.Linear: (C, H) -> stored transposed (H, C)
        "w_cls_t": u(ks[4], (hidden_size, num_text_classes), k_cls),
        "b_cls": u(ks[5], (1, num_text_classes), k_cls),
    }


if __name__ == "__main__":
    # Small shapes consistent with the module's forward:
    #   lang_feat: (B, T, emb_size), lang_len: (B,)
    B, T, EMB, HID, NUM_CLS = 2, 8, 32, 32, 8

    key = jax.random.PRNGKey(0)
    k_x, k_p = jax.random.split(key)
    word_embs = jax.random.normal(k_x, (B, T, EMB), jnp.float32)
    lang_len = jnp.array([T, 5], jnp.int32)   # variable lengths (padded seqs)
    params = init_params(k_p, EMB, HID, NUM_CLS)

    ref_emb, ref_scores = ref_forward(word_embs, lang_len, params)

    # f32 matmul path (bit-faithful to the reference).
    lang_emb, lang_scores = lang_module_forward(word_embs, lang_len, params)
    jax.block_until_ready((lang_emb, lang_scores))
    assert jnp.allclose(lang_emb, ref_emb, atol=1e-4, rtol=1e-4)
    assert jnp.allclose(lang_scores, ref_scores, atol=1e-4, rtol=1e-4)

    # bf16 matmul path (recommended on v6e/v7x): f32 accumulation + f32 gates.
    emb16, scores16 = lang_module_forward(word_embs, lang_len, params,
                                          matmul_dtype=jnp.bfloat16)
    jax.block_until_ready((emb16, scores16))
    assert jnp.allclose(emb16, ref_emb, atol=1e-1, rtol=1e-1)
    assert jnp.allclose(scores16, ref_scores, atol=1e-1, rtol=1e-1)

    print("KERNEL_OK")
</pallas_src>

<mosaic_0001>
module attributes {stable_mosaic.version = 11 : i64} {
  func.func @gru_lang_kernel(%arg0: i32, %arg1: memref<1x64x128xf32, #tpu.memory_space<vmem>>, %arg2: memref<8x1xi32, #tpu.memory_space<vmem>>, %arg3: memref<128x384xf32, #tpu.memory_space<vmem>>, %arg4: memref<128x384xf32, #tpu.memory_space<vmem>>, %arg5: memref<1x384xf32, #tpu.memory_space<vmem>>, %arg6: memref<1x384xf32, #tpu.memory_space<vmem>>, %arg7: memref<8x128xf32, #tpu.memory_space<vmem>>, %arg8: memref<64x384xf32, #tpu.memory_space<vmem>>) attributes {dimension_semantics = [#tpu.dimension_semantics<parallel>], iteration_bounds = array<i64: 1>, scalar_prefetch = 0 : i64, scratch_operands = 1 : i64, tpu.core_type = #tpu.core_type<tc>, window_params = [{transform_indices = @transform_0, window_bounds = array<i64: 1, 64, 128>}, {transform_indices = @transform_1, window_bounds = array<i64: 8, 1>}, {pipeline_mode = #tpu.pipeline_mode<synchronous>, transform_indices = @transform_2, window_bounds = array<i64: 128, 384>}, {pipeline_mode = #tpu.pipeline_mode<synchronous>, transform_indices = @transform_3, window_bounds = array<i64: 128, 384>}, {pipeline_mode = #tpu.pipeline_mode<synchronous>, transform_indices = @transform_4, window_bounds = array<i64: 1, 384>}, {pipeline_mode = #tpu.pipeline_mode<synchronous>, transform_indices = @transform_5, window_bounds = array<i64: 1, 384>}, {transform_indices = @transform_6, window_bounds = array<i64: 8, 128>}]} {
    %c0 = arith.constant 0 : index
    %c0_0 = arith.constant 0 : index
    %c0_1 = arith.constant 0 : index
    %0 = vector.load %arg1[%c0, %c0_0, %c0_1] : memref<1x64x128xf32, #tpu.memory_space<vmem>>, vector<1x64x128xf32>
    %1 = vector.shape_cast %0 : vector<1x64x128xf32> to vector<64x128xf32>
    %c0_2 = arith.constant 0 : index
    %c0_3 = arith.constant 0 : index
    %2 = vector.load %arg3[%c0_2, %c0_3] : memref<128x384xf32, #tpu.memory_space<vmem>>, vector<128x384xf32>
    %cst = arith.constant dense<0.000000e+00> : vector<64x384xf32>
    %3 = tpu.matmul %1, %2, %cst {dimension_numbers = #tpu.dot_dimension_numbers<[1], [0], [0], [1], [0, 0, 1, 1], [], []>} : vector<64x128xf32>, vector<128x384xf32>, vector<64x384xf32> -> vector<64x384xf32>
    %c0_4 = arith.constant 0 : index
    %c0_5 = arith.constant 0 : index
    %4 = vector.load %arg5[%c0_4, %c0_5] : memref<1x384xf32, #tpu.memory_space<vmem>>, vector<1x384xf32>
    %5 = vector.broadcast %4 : vector<1x384xf32> to vector<64x384xf32>
    %6 = arith.addf %3, %5 : vector<64x384xf32>
    %c0_6 = arith.constant 0 : index
    %c0_7 = arith.constant 0 : index
    %7 = vector.load %arg8[%c0_6, %c0_7] : memref<64x384xf32, #tpu.memory_space<vmem>>, vector<64x384xf32>
    tpu.vector_store %arg8[%c0_6, %c0_7], %6 {strides = array<i32>} : memref<64x384xf32, #tpu.memory_space<vmem>>, vector<64x384xf32>,
    %c0_8 = arith.constant 0 : index
    %c0_9 = arith.constant 0 : index
    %8 = vector.load %arg2[%c0_8, %c0_9] : memref<8x1xi32, #tpu.memory_space<vmem>>, vector<8x1xi32>
    %c0_10 = arith.constant 0 : index
    %c0_11 = arith.constant 0 : index
    %9 = vector.load %arg4[%c0_10, %c0_11] : memref<128x384xf32, #tpu.memory_space<vmem>>, vector<128x384xf32>
    %c0_12 = arith.constant 0 : index
    %c0_13 = arith.constant 0 : index
    %10 = vector.load %arg6[%c0_12, %c0_13] : memref<1x384xf32, #tpu.memory_space<vmem>>, vector<1x384xf32>
    %cst_14 = arith.constant 0.000000e+00 : f32
    %11 = vector.broadcast %cst_14 : f32 to vector<8x128xf32>
    %c0_i32 = arith.constant 0 : i32
    %c8_i32 = arith.constant 8 : i32
    %12 = arith.addi %c0_i32, %c8_i32 : i32
    %c1_i32 = arith.constant 1 : i32
    %13 = scf.for %arg9 = %c0_i32 to %12 step %c1_i32 iter_args(%arg10 = %11) -> (vector<8x128xf32>)  : i32 {
      %c8_i32_18 = arith.constant 8 : i32
      %15 = arith.muli %arg9, %c8_i32_18 : i32
      %16 = tpu.assume_multiple %15, 8 : i32
      %17 = arith.index_cast %16 : i32 to index
      %c0_19 = arith.constant 0 : index
      %18 = vector.load %arg8[%17, %c0_19] : memref<64x384xf32, #tpu.memory_space<vmem>>, vector<8x384xf32>
      %cst_20 = arith.constant dense<0.000000e+00> : vector<8x384xf32>
      %19 = tpu.matmul %arg10, %9, %cst_20 {dimension_numbers = #tpu.dot_dimension_numbers<[1], [0], [0], [1], [0, 0, 1, 1], [], []>} : vector<8x128xf32>, vector<128x384xf32>, vector<8x384xf32> -> vector<8x384xf32>
      %20 = vector.broadcast %10 : vector<1x384xf32> to vector<8x384xf32>
      %21 = arith.addf %19, %20 : vector<8x384xf32>
      %22 = vector.extract_strided_slice %18 {offsets = [0, 0], sizes = [8, 128], strides = [1, 1]} : vector<8x384xf32> to vector<8x128xf32>
      %23 = vector.extract_strided_slice %21 {offsets = [0, 0], sizes = [8, 128], strides = [1, 1]} : vector<8x384xf32> to vector<8x128xf32>
      %24 = arith.addf %22, %23 : vector<8x128xf32>
      %25 = arith.negf %24 : vector<8x128xf32>
      %26 = math.exp %25 : vector<8x128xf32>
      %cst_21 = arith.constant 1.000000e+00 : f32
      %27 = vector.broadcast %cst_21 : f32 to vector<8x128xf32>
      %28 = arith.addf %27, %26 : vector<8x128xf32>
      %29 = arith.divf %27, %28 : vector<8x128xf32>
      %30 = vector.extract_strided_slice %18 {offsets = [0, 128], sizes = [8, 128], strides = [1, 1]} : vector<8x384xf32> to vector<8x128xf32>
      %31 = vector.extract_strided_slice %21 {offsets = [0, 128], sizes = [8, 128], strides = [1, 1]} : vector<8x384xf32> to vector<8x128xf32>
      %32 = arith.addf %30, %31 : vector<8x128xf32>
      %33 = arith.negf %32 : vector<8x128xf32>
      %34 = math.exp %33 : vector<8x128xf32>
      %cst_22 = arith.constant 1.000000e+00 : f32
      %35 = vector.broadcast %cst_22 : f32 to vector<8x128xf32>
      %36 = arith.addf %35, %34 : vector<8x128xf32>
      %37 = arith.divf %35, %36 : vector<8x128xf32>
      %38 = vector.extract_strided_slice %18 {offsets = [0, 256], sizes = [8, 128], strides = [1, 1]} : vector<8x384xf32> to vector<8x128xf32>
      %39 = vector.extract_strided_slice %21 {offsets = [0, 256], sizes = [8, 128], strides = [1, 1]} : vector<8x384xf32> to vector<8x128xf32>
      %40 = arith.mulf %29, %39 : vector<8x128xf32>
      %41 = arith.addf %38, %40 : vector<8x128xf32>
      %42 = math.tanh %41 : vector<8x128xf32>
      %cst_23 = arith.constant 1.000000e+00 : f32
      %43 = vector.broadcast %cst_23 : f32 to vector<8x128xf32>
      %44 = arith.subf %43, %37 : vector<8x128xf32>
      %45 = arith.mulf %44, %42 : vector<8x128xf32>
      %46 = arith.mulf %37, %arg10 : vector<8x128xf32>
      %47 = arith.addf %45, %46 : vector<8x128xf32>
      %48 = vector.broadcast %arg9 : i32 to vector<8x1xi32>
      %49 = arith.cmpi slt, %48, %8 : vector<8x1xi32>
      %50 = vector.shape_cast %49 : vector<8x1xi1> to vector<8x1xi1>
      %51 = vector.broadcast %50 : vector<8x1xi1> to vector<8x128xi1>
      %52 = arith.select %51, %47, %arg10 : vector<8x128xi1>, vector<8x128xf32>
      scf.yield %52 : vector<8x128xf32>
    }
    %c8_i32_15 = arith.constant 8 : i32
    %c0_16 = arith.constant 0 : index
    %c0_17 = arith.constant 0 : index
    %14 = vector.load %arg7[%c0_16, %c0_17] : memref<8x128xf32, #tpu.memory_space<vmem>>, vector<8x128xf32>
    tpu.vector_store %arg7[%c0_16, %c0_17], %13 {strides = array<i32>} : memref<8x128xf32, #tpu.memory_space<vmem>>, vector<8x128xf32>,
    return
  }
  func.func @transform_0(%arg0: i32) -> (i32, i32, i32) {
    %c0_i32 = arith.constant 0 : i32
    %c0_i32_0 = arith.constant 0 : i32
    %c0_i32_1 = arith.constant 0 : i32
    return %arg0, %c0_i32, %c0_i32_0 : i32, i32, i32
  }
  func.func @transform_1(%arg0: i32) -> (i32, i32) {
    %c0_i32 = arith.constant 0 : i32
    %c0_i32_0 = arith.constant 0 : i32
    return %arg0, %c0_i32 : i32, i32
  }
  func.func @transform_2(%arg0: i32) -> (i32, i32) {
    %c0_i32 = arith.constant 0 : i32
    %c0_i32_0 = arith.constant 0 : i32
    %c0_i32_1 = arith.constant 0 : i32
    return %c0_i32, %c0_i32_0 : i32, i32
  }
  func.func @transform_3(%arg0: i32) -> (i32, i32) {
    %c0_i32 = arith.constant 0 : i32
    %c0_i32_0 = arith.constant 0 : i32
    %c0_i32_1 = arith.constant 0 : i32
    return %c0_i32, %c0_i32_0 : i32, i32
  }
  func.func @transform_4(%arg0: i32) -> (i32, i32) {
    %c0_i32 = arith.constant 0 : i32
    %c0_i32_0 = arith.constant 0 : i32
    %c0_i32_1 = arith.constant 0 : i32
    return %c0_i32, %c0_i32_0 : i32, i32
  }
  func.func @transform_5(%arg0: i32) -> (i32, i32) {
    %c0_i32 = arith.constant 0 : i32
    %c0_i32_0 = arith.constant 0 : i32
    %c0_i32_1 = arith.constant 0 : i32
    return %c0_i32, %c0_i32_0 : i32, i32
  }
  func.func @transform_6(%arg0: i32) -> (i32, i32) {
    %c0_i32 = arith.constant 0 : i32
    %c0_i32_0 = arith.constant 0 : i32
    return %arg0, %c0_i32 : i32, i32
  }
}

</mosaic_0001>

<bundles_post_ra>
// kernel: tpu_custom_call.1
= control target key start
LH: loop header
LB: loop body
LE: loop exit
PB: predicated region body
PF: predicated region fallthrough
CT: control target
= control target key end

     0   :  { %11 = vsyncpa [#allocation4], 0  ;;  %s1229_s0 = inlined_call_operand.hbm [shape: f32[1,64,128], index: 0, kind: input, shape index: {}]   ;;  %s1230_s1 = inlined_call_operand.vmem [shape: s32[8,1], index: 1, kind: input, shape index: {}]   ;;  %s1231_s2 = inlined_call_operand.hbm [shape: f32[128,384], index: 2, kind: input, shape index: {}]   ;;  %s1232_s3 = inlined_call_operand.hbm [shape: f32[128,384], index: 3, kind: input, shape index: {}]   ;;  %s1233_s4 = inlined_call_operand.vmem [shape: f32[1,384], index: 4, kind: input, shape index: {}]   ;;  %s1234_s5 = inlined_call_operand.vmem [shape: f32[1,384], index: 5, kind: input, shape index: {}]   ;;  %s1235_s6 = inlined_call_operand.hbm [shape: f32[8,128], index: 6, kind: output, shape index: {}]  }
   0x1   :  { %12 = vsyncpa [#allocation7], 0 }
   0x2   :  { %13 = vsyncpa [#allocation5], 0  ;;  %s925_s21 = smov [#allocation6]  }
   0x3   :  { %s33_s22 = sshll.u32 %s925_s21, 4  ;;  %s34_s22 = int_to_ptr.vmem [resolvable:$true] %s33_s22 }
   0x4   :  { %s831_s23 = scalar_lea.vmem %s34_s22, 6144  ;;  %p836_p1 = scmp.lt.s32.totalorder %s34_s22, %s34_s22 }
   0x5   :  { %p832_p0 = scmp.ne.s32.totalorder %s34_s22, %s831_s23  ;;  %p837_p2 = scmp.lt.s32.totalorder %s831_s23, %s831_s23 }
   0x7   :  { %p838_p3 = por %p837_p2, %p836_p1 }
   0x9   :  { %p839_p4 = pnand %p838_p3, %p832_p0 }
   0xb   :  { %842 = shalt.err (!%p839_p4)
}
   0xc   :  { %s926_s24 = smov 384   ;;  %s927_s25 = smov 24  }
   0xd   :  { %39 = dma.hbm_to_vmem [thread:$0]  %s1231_s2, 6144, %s34_s22, [#allocation7], %s926_s24, %s926_s24, %s927_s25  }
   0xe   :  { %s928_s28 = smov [#allocation3]  }
   0xf   :  { %s19_s29 = sshll.u32 %s928_s28, 4  ;;  %s20_s29 = int_to_ptr.vmem [resolvable:$true] %s19_s29 }
  0x10   :  { %s851_s30 = scalar_lea.vmem %s20_s29, 1024  ;;  %p856_p6 = scmp.lt.s32.totalorder %s20_s29, %s20_s29 }
  0x11   :  { %p852_p5 = scmp.ne.s32.totalorder %s20_s29, %s851_s30  ;;  %p857_p7 = scmp.lt.s32.totalorder %s851_s30, %s851_s30 }
  0x13   :  { %p858_p8 = por %p857_p7, %p856_p6 }
  0x15   :  { %p859_p9 = pnand %p858_p8, %p852_p5 }
  0x17   :  { %862 = shalt.err (!%p859_p9)
}
  0x18   :  { %s929_s7 = smov 128   ;;  %s930_s8 = smov 8  }
  0x19   :  { %25 = dma.hbm_to_vmem [thread:$0]  %s1229_s0, 1024, %s20_s29, [#allocation4], %s929_s7, %s929_s7, %s930_s8  }
  0x1a   :  { %s931_s11 = smov [#allocation8]  }
  0x1b   :  { %s45_s12 = sshll.u32 %s931_s11, 4  ;;  %s46_s12 = int_to_ptr.vmem [resolvable:$true] %s45_s12 }
  0x1c   :  { %s871_s2 = scalar_lea.vmem %s46_s12, 6144  ;;  %p876_p11 = scmp.lt.s32.totalorder %s46_s12, %s46_s12 }
  0x1d   :  { %p872_p10 = scmp.ne.s32.totalorder %s46_s12, %s871_s2  ;;  %p877_p12 = scmp.lt.s32.totalorder %s871_s2, %s871_s2 }
  0x1f   :  { %p878_p13 = por %p877_p12, %p876_p11 }
  0x21   :  { %p879_p0 = pnand %p878_p13, %p872_p10 }
  0x23   :  { %882 = shalt.err (!%p879_p0)
}
  0x24   :  { %51 = dma.hbm_to_vmem [thread:$0]  %s1232_s3, 6144, %s46_s12, [#allocation7], %s926_s24, %s926_s24, %s927_s25  }
  0x25   :  { %911 = dma.done.wait [#allocation4], 1024  }
  0x26   :  { %912 = vsyncadd [#allocation4], 4294966272 }
  0x27   :  { %913 = dma.done.wait [#allocation7], 12288  }
  0x28   :  { %914 = vsyncadd [#allocation7], 4294955008  ;;  %v1236_v0 = vmov 0.0   ;;  %v985_v1 = vld [vmem:[%s1230_s1] sm:$0xff]  ;;  %v989_v3 = vld [vmem:[#allocation8 + $0x8] sm:$0xff] }
  0x29   :  { %202 = vmatprep.mubr.f32.mxu0 %v1236_v0  ;;  %1244 = vst [vmem:[#allocation13_spill] sm:$0xff] %v985_v1  ;;  %v987_v2 = vld [vmem:[#allocation8] sm:$0xff]  ;;  %1246 = vst [vmem:[#allocation15_spill] sm:$0xff] %v989_v3  ;;  %v991_v4 = vld [vmem:[#allocation8 + $0x10] sm:$0xff] }
  0x2a   :  { %1245 = vst [vmem:[#allocation14_spill] sm:$0xff] %v987_v2  ;;  %1247 = vst [vmem:[#allocation16_spill] sm:$0xff] %v991_v4  ;;  %v993_v5 = vld [vmem:[#allocation8 + $0x18] sm:$0xff]  ;;  %v995_v6 = vld [vmem:[#allocation8 + $0x20] sm:$0xff] }
  0x2b   :  { %1248 = vst [vmem:[#allocation17_spill] sm:$0xff] %v993_v5  ;;  %1249 = vst [vmem:[#allocation18_spill] sm:$0xff] %v995_v6  ;;  %v997_v7 = vld [vmem:[#allocation8 + $0x28] sm:$0xff]  ;;  %v999_v8 = vld [vmem:[#allocation8 + $0x30] sm:$0xff] }
  0x2c   :  { %1250 = vst [vmem:[#allocation19_spill] sm:$0xff] %v997_v7  ;;  %1251 = vst [vmem:[#allocation20_spill] sm:$0xff] %v999_v8  ;;  %v1001_v9 = vld [vmem:[#allocation8 + $0x38] sm:$0xff]  ;;  %v1003_v10 = vld [vmem:[#allocation8 + $0x40] sm:$0xff] }
  0x2d   :  { %v1005_v11 = vld [vmem:[#allocation8 + $0x48] sm:$0xff]  ;;  %v1007_v12 = vld [vmem:[#allocation8 + $0x50] sm:$0xff]  ;;  %v1009_v13 = vld [vmem:[#allocation8 + $0x58] sm:$0xff] }
  0x2e   :  { %v1011_v14 = vld [vmem:[#allocation8 + $0x60] sm:$0xff]  ;;  %v1013_v15 = vld [vmem:[#allocation8 + $0x68] sm:$0xff]  ;;  %v1015_v16 = vld [vmem:[#allocation8 + $0x70] sm:$0xff] }
  0x2f   :  { %v1017_v17 = vld [vmem:[#allocation8 + $0x78] sm:$0xff]  ;;  %v1019_v18 = vld [vmem:[#allocation8 + $0x80] sm:$0xff]  ;;  %v1021_v19 = vld [vmem:[#allocation8 + $0x88] sm:$0xff] }
  0x30   :  { %v1023_v20 = vld [vmem:[#allocation8 + $0x90] sm:$0xff]  ;;  %v1025_v21 = vld [vmem:[#allocation8 + $0x98] sm:$0xff]  ;;  %v1027_v22 = vld [vmem:[#allocation8 + $0xa0] sm:$0xff] }
  0x31   :  { %v1029_v23 = vld [vmem:[#allocation8 + $0xa8] sm:$0xff]  ;;  %v1031_v24 = vld [vmem:[#allocation8 + $0xb0] sm:$0xff]  ;;  %v1033_v25 = vld [vmem:[#allocation8 + $0xb8] sm:$0xff] }
  0x32   :  { %v1035_v26 = vld [vmem:[#allocation8 + $0xc0] sm:$0xff]  ;;  %v1037_v27 = vld [vmem:[#allocation8 + $0xc8] sm:$0xff]  ;;  %v1039_v28 = vld [vmem:[#allocation8 + $0xd0] sm:$0xff] }
  0x33   :  { %v1041_v29 = vld [vmem:[#allocation8 + $0xd8] sm:$0xff]  ;;  %v1043_v30 = vld [vmem:[#allocation8 + $0xe0] sm:$0xff]  ;;  %v1045_v31 = vld [vmem:[#allocation8 + $0xe8] sm:$0xff] }
  0x34   :  { %v1047_v32 = vld [vmem:[#allocation8 + $0xf0] sm:$0xff]  ;;  %v1049_v33 = vld [vmem:[#allocation8 + $0xf8] sm:$0xff]  ;;  %v1051_v34 = vld [vmem:[#allocation8 + $0x100] sm:$0xff] }
  0x35   :  { %v1053_v35 = vld [vmem:[#allocation8 + $0x108] sm:$0xff]  ;;  %v1055_v36 = vld [vmem:[#allocation8 + $0x110] sm:$0xff]  ;;  %v1057_v37 = vld [vmem:[#allocation8 + $0x118] sm:$0xff] }
  0x36   :  { %v1059_v38 = vld [vmem:[#allocation8 + $0x120] sm:$0xff]  ;;  %v1061_v39 = vld [vmem:[#allocation8 + $0x128] sm:$0xff]  ;;  %v1063_v40 = vld [vmem:[#allocation8 + $0x130] sm:$0xff] }
  0x37   :  { %v1065_v41 = vld [vmem:[#allocation8 + $0x138] sm:$0xff]  ;;  %v1067_v42 = vld [vmem:[#allocation8 + $0x140] sm:$0xff]  ;;  %v1069_v43 = vld [vmem:[#allocation8 + $0x148] sm:$0xff] }
  0x38   :  { %v1071_v44 = vld [vmem:[#allocation8 + $0x150] sm:$0xff]  ;;  %v1073_v45 = vld [vmem:[#allocation8 + $0x158] sm:$0xff]  ;;  %v1075_v46 = vld [vmem:[#allocation8 + $0x160] sm:$0xff] }
  0x39   :  { %v1077_v47 = vld [vmem:[#allocation8 + $0x168] sm:$0xff]  ;;  %v1079_v48 = vld [vmem:[#allocation8 + $0x170] sm:$0xff]  ;;  %v1081_v49 = vld [vmem:[#allocation8 + $0x178] sm:$0xff] }
  0x3a   :  { %v1086_v50 = vld [vmem:[%s1234_s5] sm:$0x7]  ;;  %v119_v51 = vld [vmem:[#allocation6 + $0x170] sm:$0xff]  ;;  %v118_v52 = vld [vmem:[#allocation6 + $0x168] sm:$0xff] }
  0x3b   :  { %1252 = vst [vmem:[#allocation21_spill] sm:$0xff] %v1086_v50  ;;  %138 = vmatprep.subr.mxu0 %v119_v51  ;;  %v116_v53 = vld [vmem:[#allocation6 + $0x158] sm:$0xff]  ;;  %v115_v54 = vld [vmem:[#allocation6 + $0x150] sm:$0xff]  ;;  %v113_v55 = vld [vmem:[#allocation6 + $0x140] sm:$0xff] }
  0x3c   :  { %139 = vmatpush1.msra.mxu0 %v118_v52  ;;  %v112_v56 = vld [vmem:[#allocation6 + $0x138] sm:$0xff]  ;;  %v110_v57 = vld [vmem:[#allocation6 + $0x128] sm:$0xff]  ;;  %v109_v58 = vld [vmem:[#allocation6 + $0x120] sm:$0xff] }
  0x3d   :  { %140 = vmatprep.subr.mxu0 %v116_v53  ;;  %v120_v59 = vld [vmem:[#allocation6 + $0x178] sm:$0xff]  ;;  %v107_v60 = vld [vmem:[#allocation6 + $0x110] sm:$0xff]  ;;  %v117_v61 = vld [vmem:[#allocation6 + $0x160] sm:$0xff] }
  0x3e   :  { %141 = vmatpush1.msra.mxu0 %v115_v54  ;;  %705 = vmatprep.subr.mxu1 %v120_v59  ;;  %v106_v62 = vld [vmem:[#allocation6 + $0x108] sm:$0xff]  ;;  %v104_v51 = vld [vmem:[#allocation6 + $0xf8] sm:$0xff]  ;;  %v103_v52 = vld [vmem:[#allocation6 + $0xf0] sm:$0xff] }
  0x3f   :  { %142 = vmatprep.subr.mxu0 %v113_v55  ;;  %706 = vmatpush3.msra.mxu1 %v120_v59  ;;  %v114_v63 = vld [vmem:[#allocation6 + $0x148] sm:$0xff]  ;;  %v111_v53 = vld [vmem:[#allocation6 + $0x130] sm:$0xff]  ;;  %v101_v54 = vld [vmem:[#allocation6 + $0xe0] sm:$0xff] }
  0x40   :  { %143 = vmatpush1.msra.mxu0 %v112_v56  ;;  %707 = vmatprep.subr.mxu1 %v117_v61  ;;  %v100_v55 = vld [vmem:[#allocation6 + $0xd8] sm:$0xff]  ;;  %v98_v0 = vld [vmem:[#allocation6 + $0xc8] sm:$0xff]  ;;  %v95_v59 = vld [vmem:[#allocation6 + $0xb0] sm:$0xff] }
  0x41   :  { %144 = vmatprep.subr.mxu0 %v110_v57  ;;  %708 = vmatpush3.msra.mxu1 %v117_v61  ;;  %v108_v56 = vld [vmem:[#allocation6 + $0x118] sm:$0xff]  ;;  %v97_v57 = vld [vmem:[#allocation6 + $0xc0] sm:$0xff]  ;;  %v102_v61 = vld [vmem:[#allocation6 + $0xe8] sm:$0xff] }
  0x42   :  { %145 = vmatpush1.msra.mxu0 %v109_v58  ;;  %709 = vmatprep.subr.mxu1 %v114_v63  ;;  %v105_v58 = vld [vmem:[#allocation6 + $0x100] sm:$0xff] }
  0x43   :  { %146 = vmatprep.subr.mxu0 %v107_v60  ;;  %710 = vmatpush3.msra.mxu1 %v114_v63  ;;  %v94_v60 = vld [vmem:[#allocation6 + $0xa8] sm:$0xff]  ;;  %v91_v63 = vld [vmem:[#allocation6 + $0x90] sm:$0xff] }
  0x44   :  { %147 = vmatpush1.msra.mxu0 %v106_v62  ;;  %711 = vmatprep.subr.mxu1 %v111_v53  ;;  %v92_v62 = vld [vmem:[#allocation6 + $0x98] sm:$0xff] }
  0x45   :  { %148 = vmatprep.subr.mxu0 %v104_v51  ;;  %712 = vmatpush3.msra.mxu1 %v111_v53  ;;  %v99_v51 = vld [vmem:[#allocation6 + $0xd0] sm:$0xff]  ;;  %v88_v53 = vld [vmem:[#allocation6 + $0x78] sm:$0xff] }
  0x46   :  { %149 = vmatpush1.msra.mxu0 %v103_v52  ;;  %713 = vmatprep.subr.mxu1 %v108_v56  ;;  %v89_v52 = vld [vmem:[#allocation6 + $0x80] sm:$0xff] }
  0x47   :  { %150 = vmatprep.subr.mxu0 %v101_v54  ;;  %714 = vmatpush3.msra.mxu1 %v108_v56  ;;  %v96_v54 = vld [vmem:[#allocation6 + $0xb8] sm:$0xff]  ;;  %v93_v56 = vld [vmem:[#allocation6 + $0xa0] sm:$0xff] }
  0x48   :  { %151 = vmatpush1.msra.mxu0 %v100_v55  ;;  %715 = vmatprep.subr.mxu1 %v105_v58  ;;  %v86_v55 = vld [vmem:[#allocation6 + $0x68] sm:$0xff] }
  0x49   :  { %152 = vmatprep.subr.mxu0 %v98_v0  ;;  %716 = vmatpush3.msra.mxu1 %v105_v58  ;;  %v85_v0 = vld [vmem:[#allocation6 + $0x60] sm:$0xff]  ;;  %v82_v58 = vld [vmem:[#allocation6 + $0x48] sm:$0xff] }
  0x4a   :  { %153 = vmatpush1.msra.mxu0 %v97_v57  ;;  %717 = vmatprep.subr.mxu1 %v102_v61  ;;  %v83_v57 = vld [vmem:[#allocation6 + $0x50] sm:$0xff] }
  0x4b   :  { %154 = vmatprep.subr.mxu0 %v95_v59  ;;  %718 = vmatpush3.msra.mxu1 %v102_v61  ;;  %v90_v59 = vld [vmem:[#allocation6 + $0x88] sm:$0xff]  ;;  %v79_v61 = vld [vmem:[#allocation6 + $0x30] sm:$0xff] }
  0x4c   :  { %155 = vmatpush1.msra.mxu0 %v94_v60  ;;  %719 = vmatprep.subr.mxu1 %v99_v51  ;;  %v80_v60 = vld [vmem:[#allocation6 + $0x38] sm:$0xff] }
  0x4d   :  { %156 = vmatprep.subr.mxu0 %v92_v62  ;;  %720 = vmatpush3.msra.mxu1 %v99_v51  ;;  %v87_v62 = vld [vmem:[#allocation6 + $0x70] sm:$0xff]  ;;  %v76_v51 = vld [vmem:[#allocation6 + $0x18] sm:$0xff] }
  0x4e   :  { %157 = vmatpush1.msra.mxu0 %v91_v63  ;;  %721 = vmatprep.subr.mxu1 %v96_v54  ;;  %v77_v63 = vld [vmem:[#allocation6 + $0x20] sm:$0xff] }
  0x4f   :  { %158 = vmatprep.subr.mxu0 %v89_v52  ;;  %722 = vmatpush3.msra.mxu1 %v96_v54  ;;  %v84_v52 = vld [vmem:[#allocation6 + $0x58] sm:$0xff]  ;;  %v73_v54 = vld [vmem:[#allocation6] sm:$0xff] }
  0x50   :  { %159 = vmatpush1.msra.mxu0 %v88_v53  ;;  %723 = vmatprep.subr.mxu1 %v93_v56  ;;  %v74_v53 = vld [vmem:[#allocation6 + $0x8] sm:$0xff] }
  0x51   :  { %160 = vmatprep.subr.mxu0 %v86_v55  ;;  %724 = vmatpush3.msra.mxu1 %v93_v56  ;;  %v81_v55 = vld [vmem:[#allocation6 + $0x40] sm:$0xff]  ;;  %v78_v56 = vld [vmem:[#allocation6 + $0x28] sm:$0xff] }
  0x52   :  { %161 = vmatpush1.msra.mxu0 %v85_v0  ;;  %725 = vmatprep.subr.mxu1 %v90_v59  ;;  %v65_v0 = vld [vmem:[#allocation3] sm:$0xff] }
  0x53   :  { %162 = vmatprep.subr.mxu0 %v83_v57  ;;  %726 = vmatpush3.msra.mxu1 %v90_v59  ;;  %v75_v57 = vld [vmem:[#allocation6 + $0x10] sm:$0xff]  ;;  %v66_v59 = vld [vmem:[#allocation3 + $0x8] sm:$0xff] }
  0x54   :  { %163 = vmatpush1.msra.mxu0 %v82_v58  ;;  %727 = vmatprep.subr.mxu1 %v87_v62  ;;  %v1253_v58 = vmov 0.0  }
  0x55   :  { %164 = vmatprep.subr.mxu0 %v80_v60  ;;  %728 = vmatpush3.msra.mxu1 %v87_v62  ;;  %v67_v60 = vld [vmem:[#allocation3 + $0x10] sm:$0xff]  ;;  %v69_v62 = vld [vmem:[#allocation3 + $0x20] sm:$0xff] }
  0x56   :  { %165 = vmatpush1.msra.mxu0 %v79_v61  ;;  %729 = vmatprep.subr.mxu1 %v84_v52  ;;  %v68_v61 = vld [vmem:[#allocation3 + $0x18] sm:$0xff] }
  0x57   :  { %166 = vmatprep.subr.mxu0 %v77_v63  ;;  %730 = vmatpush3.msra.mxu1 %v84_v52  ;;  %v71_v63 = vld [vmem:[#allocation3 + $0x30] sm:$0xff]  ;;  %v72_v52 = vld [vmem:[#allocation3 + $0x38] sm:$0xff] }
  0x58   :  { %167 = vmatpush1.msra.mxu0 %v76_v51  ;;  %731 = vmatprep.subr.mxu1 %v81_v55  ;;  %v70_v51 = vld [vmem:[#allocation3 + $0x28] sm:$0xff] }
  0x59   :  { %168 = vmatprep.subr.mxu0 %v74_v53  ;;  %732 = vmatpush3.msra.mxu1 %v81_v55  ;;  %v123_v53 = vlaneseq }
  0x5a   :  { %169 = vmatpush1.msra.mxu0 %v73_v54  ;;  %733 = vmatprep.subr.mxu1 %v78_v56 }
  0x5b   :  { %203 = vmatmul.mubr.f32.vlgmr.msra.gmra.mxu0 %v65_v0  ;;  %734 = vmatpush3.msra.mxu1 %v78_v56  ;;  %v1095_v54 = vshrl.u32 %v123_v53, 7 }
  0x5c   :  { %208 = vmatprep.mubr.f32.mxu0 %v1253_v58  ;;  %737 = vmatprep.mubr.f32.mxu1 %v65_v0  ;;  %v121_v0 = vld [vmem:[%s1233_s4] sm:$0x7]  ;;  %s1131_s4 = smov 0  }
  0x5d   :  { %735 = vmatprep.subr.mxu1 %v75_v57  ;;  %1254 = vst [vmem:[#allocation22_spill] sm:$0xff] %v1095_v54  ;;  %v1238_v55 = vsub.s32 0, %v1095_v54  ;;  %v1240_v56 = vsub.s32 1, %v1095_v54 }
  0x5e   :  { %736 = vmatpush3.msra.mxu1 %v75_v57 }
  0x5f   :  { %209 = vmatmul.mubr.f32.gmra.mxu0 %v66_v59  ;;  %738 = vmatmul.mubr.f32.vlgmr.msra.gmra.mxu1 %v66_v59  ;;  %v1104_v57 = vrot.slane %v121_v0, %v1238_v55  ;;  %v1241_v59 = vsub.s32 2, %v1095_v54 }
  0x60   :  { %214 = vmatprep.mubr.f32.mxu0 %v1253_v58  ;;  %740 = vmatprep.mubr.f32.mxu1 %v67_v60 }
  0x63   :  { %215 = vmatmul.mubr.f32.gmra.mxu0 %v67_v60  ;;  %741 = vmatmul.mubr.f32.gmra.mxu1 %v68_v61 }
  0x64   :  { %220 = vmatprep.mubr.f32.mxu0 %v1253_v58  ;;  %743 = vmatprep.mubr.f32.mxu1 %v69_v62 }
  0x67   :  { %221 = vmatmul.mubr.f32.gmra.mxu0 %v68_v61  ;;  %744 = vmatmul.mubr.f32.gmra.mxu1 %v70_v51 }
  0x68   :  { %226 = vmatprep.mubr.f32.mxu0 %v1253_v58  ;;  %746 = vmatprep.mubr.f32.mxu1 %v71_v63 }
  0x6b   :  { %227 = vmatmul.mubr.f32.gmra.mxu0 %v69_v62  ;;  %747 = vmatmul.mubr.f32.gmra.mxu1 %v72_v52 }
  0x6c   :  { %232 = vmatprep.mubr.f32.mxu0 %v1253_v58 }
  0x6f   :  { %233 = vmatmul.mubr.f32.gmra.mxu0 %v70_v51 }
  0x70   :  { %238 = vmatprep.mubr.f32.mxu0 %v1253_v58 }
  0x73   :  { %239 = vmatmul.mubr.f32.gmra.mxu0 %v71_v63  ;;  %v134_v63 = vrot.slane %v121_v0, %v1241_v59 }
  0x74   :  { %244 = vmatprep.mubr.f32.mxu0 %v1253_v58  ;;  %v1109_v58 = vrot.slane %v121_v0, %v1240_v56 }
  0x77   :  { %245 = vmatmul.mubr.f32.gmra.mxu0 %v72_v52 }
 0x11b   :  { %v204_v60 = vpop.f32.mrf.mxu0 }
 0x11c   :  { %v205_v61 = vadd.f32 %v204_v60, %v1104_v57 }
 0x11d   :  { %v206_v62 = vpop.f32.mrf.mxu0 }
 0x11e   :  { %356 = vst [vmem:[#allocation2] sm:$0xff] %v205_v61  ;;  %v207_v51 = vadd.f32 %v206_v62, %v1109_v58 }
 0x11f   :  { %v210_v52 = vpop.f32.mrf.mxu0  ;;  %v739_v55 = vpop.f32.mrf.mxu1 }
 0x120   :  { %357 = vst [vmem:[#allocation2 + $0x8] sm:$0xff] %v207_v51  ;;  %v211_v53 = vadd.f32 %v210_v52, %v1104_v57  ;;  %v323_v4 = vadd.f32 %v739_v55, %v134_v63 }
 0x121   :  { %v212_v50 = vpop.f32.mrf.mxu0  ;;  %v317_v7 = vpop.f32.mrf.mxu1 }
 0x122   :  { %359 = vst [vmem:[#allocation2 + $0x18] sm:$0xff] %v211_v53  ;;  %v213_v56 = vadd.f32 %v212_v50, %v1109_v58  ;;  %361 = vst [vmem:[#allocation2 + $0x28] sm:$0xff] %v323_v4  ;;  %v318_v60 = vadd.f32 %v317_v7, %v134_v63 }
 0x123   :  { %v216_v2 = vpop.f32.mrf.mxu0  ;;  %v742_v61 = vpop.f32.mrf.mxu1 }
 0x124   :  { %360 = vst [vmem:[#allocation2 + $0x20] sm:$0xff] %v213_v56  ;;  %v217_v0 = vadd.f32 %v216_v2, %v1104_v57  ;;  %358 = vst [vmem:[#allocation2 + $0x10] sm:$0xff] %v318_v60  ;;  %v333_v62 = vadd.f32 %v742_v61, %v134_v63 }
 0x125   :  { %v218_v59 = vpop.f32.mrf.mxu0  ;;  %v327_v52 = vpop.f32.mrf.mxu1 }
 0x126   :  { %362 = vst [vmem:[#allocation2 + $0x30] sm:$0xff] %v217_v0  ;;  %v219_v51 = vadd.f32 %v218_v59, %v1109_v58  ;;  %367 = vst [vmem:[#allocation2 + $0x58] sm:$0xff] %v333_v62  ;;  %v328_v55 = vadd.f32 %v327_v52, %v134_v63 }
 0x127   :  { %v222_v54 = vpop.f32.mrf.mxu0  ;;  %v745_v53 = vpop.f32.mrf.mxu1 }
 0x128   :  { %363 = vst [vmem:[#allocation2 + $0x38] sm:$0xff] %v219_v51  ;;  %v223_v50 = vadd.f32 %v222_v54, %v1104_v57  ;;  %364 = vst [vmem:[#allocation2 + $0x40] sm:$0xff] %v328_v55  ;;  %v343_v7 = vadd.f32 %v745_v53, %v134_v63 }
 0x129   :  { %v224_v4 = vpop.f32.mrf.mxu0  ;;  %v337_v56 = vpop.f32.mrf.mxu1 }
 0x12a   :  { %365 = vst [vmem:[#allocation2 + $0x48] sm:$0xff] %v223_v50  ;;  %v225_v2 = vadd.f32 %v224_v4, %v1109_v58  ;;  %373 = vst [vmem:[#allocation2 + $0x88] sm:$0xff] %v343_v7  ;;  %v338_v0 = vadd.f32 %v337_v56, %v134_v63 }
 0x12b   :  { %v228_v60 = vpop.f32.mrf.mxu0  ;;  %v748_v61 = vpop.f32.mrf.mxu1 }
 0x12c   :  { %366 = vst [vmem:[#allocation2 + $0x50] sm:$0xff] %v225_v2  ;;  %v229_v59 = vadd.f32 %v228_v60, %v1104_v57  ;;  %370 = vst [vmem:[#allocation2 + $0x70] sm:$0xff] %v338_v0  ;;  %v353_v51 = vadd.f32 %v748_v61, %v134_v63 }
 0x12d   :  { %v230_v62 = vpop.f32.mrf.mxu0  ;;  %v347_v52 = vpop.f32.mrf.mxu1 }
 0x12e   :  { %368 = vst [vmem:[#allocation2 + $0x60] sm:$0xff] %v229_v59  ;;  %v231_v54 = vadd.f32 %v230_v62, %v1109_v58  ;;  %379 = vst [vmem:[#allocation2 + $0xb8] sm:$0xff] %v353_v51  ;;  %v348_v50 = vadd.f32 %v347_v52, %v134_v63  ;;  %v1129_v51 = vmov 0.0  }
 0x12f   :  { %v234_v55 = vpop.f32.mrf.mxu0 }
 0x130   :  { %369 = vst [vmem:[#allocation2 + $0x68] sm:$0xff] %v231_v54  ;;  %v235_v53 = vadd.f32 %v234_v55, %v1104_v57  ;;  %376 = vst [vmem:[#allocation2 + $0xa0] sm:$0xff] %v348_v50 }
 0x131   :  { %v236_v4 = vpop.f32.mrf.mxu0 }
 0x132   :  { %371 = vst [vmem:[#allocation2 + $0x78] sm:$0xff] %v235_v53  ;;  %v237_v7 = vadd.f32 %v236_v4, %v1109_v58 }
 0x133   :  { %v240_v2 = vpop.f32.mrf.mxu0 }
 0x134   :  { %372 = vst [vmem:[#allocation2 + $0x80] sm:$0xff] %v237_v7  ;;  %v241_v56 = vadd.f32 %v240_v2, %v1104_v57 }
 0x135   :  { %v242_v60 = vpop.f32.mrf.mxu0 }
 0x136   :  { %374 = vst [vmem:[#allocation2 + $0x90] sm:$0xff] %v241_v56  ;;  %v243_v0 = vadd.f32 %v242_v60, %v1109_v58 }
 0x137   :  { %v246_v59 = vpop.f32.mrf.mxu0 }
 0x138   :  { %375 = vst [vmem:[#allocation2 + $0x98] sm:$0xff] %v243_v0  ;;  %v247_v63 = vadd.f32 %v246_v59, %v1104_v57 }
 0x139   :  { %v248_v61 = vpop.f32.mrf.mxu0 }
 0x13a   :  { %377 = vst [vmem:[#allocation2 + $0xa8] sm:$0xff] %v247_v63  ;;  %v249_v62 = vadd.f32 %v248_v61, %v1109_v58 }
 0x13c   :  { %378 = vst [vmem:[#allocation2 + $0xb0] sm:$0xff] %v249_v62 }
 0x13d LB: > { %462 = vmatprep.subr.mxu0 %v1079_v48  ;;  %v933_v57 = vmov 0.0   ;;  %v624_v58 = vstv %s923_s4  ;;  %v1255_v8 = vld [vmem:[#allocation20_spill] sm:$0xff]  ;;  %v1256_v6 = vld [vmem:[#allocation18_spill] sm:$0xff]  ;;  %v1257_v5 = vld [vmem:[#allocation17_spill] sm:$0xff]  ;;  %v934_v55 = vmov 0   ;;  %vm935_vm1 = vmmov 0   ;;  %s923_s4 = sphi %s1131_s4, %s435_s4   ;;  %v919_v51 = vphi %v1129_v51, %v1268_v51  }
 0x13e   : > { %463 = vmatpush1.msra.mxu0 %v1077_v47  ;;  %526 = vmatprep.mubr.f32.mxu0 %v933_v57  ;;  %v1258_v1 = vld [vmem:[#allocation13_spill] sm:$0xff]  ;;  %v1259_v3 = vld [vmem:[#allocation15_spill] sm:$0xff]  ;;  %v1260_v54 = vld [vmem:[#allocation14_spill] sm:$0xff]  ;;  %s659_s17 = sshll.u32 %s923_s4, 3  ;;  %s435_s4 = sadd.s32 1, %s923_s4  }
 0x13f   : > { %464 = vmatprep.subr.mxu0 %v1073_v45  ;;  %749 = vmatprep.subr.mxu1 %v933_v57  ;;  %vm625_vm0 = vcmp.lt.s32.totalorder %v624_v58, %v1258_v1  ;;  %v1261_v52 = vld [vmem:[#allocation19_spill] sm:$0xff]  ;;  %v1262_v53 = vld [vmem:[#allocation16_spill] sm:$0xff]  ;;  %s438_s18 = sshra.s32 %s659_s17, 3  ;;  %v1263_v4 = vld [vmem:[#allocation22_spill] sm:$0xff]  ;;  %p432_p1 = scmp.ge.s32.totalorder %s435_s4, 8  }
 0x140   : > { %465 = vmatpush1.msra.mxu0 %v1071_v44  ;;  %750 = vmatpush3.msra.mxu1 %v1081_v49  ;;  %v626_v50 = vsel %vm625_vm0, 1, %v934_v55  ;;  %s663_s19 = smul.u32 24, %s438_s18  ;;  %v1264_v7 = vsub.s32 0, %v1263_v4  ;;  %v1265_v2 = vld [vmem:[#allocation21_spill] sm:$0xff]  ;;  %v1266_v63 = vsub.s32 1, %v1263_v4  ;;  %s936_s21 = smov (%p432_p1), [#allocation9]  }
 0x141   : > { %466 = vmatprep.subr.mxu0 %v1067_v42  ;;  %751 = vmatprep.subr.mxu1 %v933_v57  ;;  %s639_s22 = sshll.u32 (%p432_p1), %s936_s21, 4  ;;  %s640_s22 = int_to_ptr.vmem [resolvable:$true] %s639_s22 }
 0x142   : > { %467 = vmatpush1.msra.mxu0 %v1065_v41  ;;  %752 = vmatpush3.msra.mxu1 %v1075_v46  ;;  %v450_v56 = vrot.slane %v1265_v2, %v1264_v7  ;;  %s442_s20 = scalar_lea.vmem [#allocation2], %s663_s19  ;;  %v454_v61 = vrot.slane %v1265_v2, %v1266_v63  ;;  %s883_s23 = scalar_lea.vmem (%p432_p1), %s640_s22, 128 }
 0x143   : > { %468 = vmatprep.subr.mxu0 %v1061_v39  ;;  %753 = vmatprep.subr.mxu1 %v933_v57  ;;  %v443_v60 = vld [vmem:[%s442_s20] sm:$0xff]  ;;  %p884_p2 = scmp.ne.s32.totalorder (%p432_p1), %s640_s22, %s883_s23  ;;  %p888_p3 = scmp.lt.s32.totalorder (%p432_p1), %s640_s22, %s640_s22 }
 0x144   : > { %469 = vmatpush1.msra.mxu0 %v1059_v38  ;;  %754 = vmatpush3.msra.mxu1 %v1069_v43  ;;  %p889_p4 = scmp.lt.s32.totalorder (%p432_p1), %s883_s23, %s883_s23 }
 0x145   : > { %470 = vmatprep.subr.mxu0 %v1055_v36  ;;  %755 = vmatprep.subr.mxu1 %v933_v57 }
 0x146   : > { %471 = vmatpush1.msra.mxu0 %v1053_v35  ;;  %756 = vmatpush3.msra.mxu1 %v1063_v40  ;;  %p890_p5 = por (%p432_p1), %p889_p4, %p888_p3 }
 0x147   : > { %472 = vmatprep.subr.mxu0 %v1049_v33  ;;  %757 = vmatprep.subr.mxu1 %v933_v57 }
 0x148   : > { %473 = vmatpush1.msra.mxu0 %v1047_v32  ;;  %758 = vmatpush3.msra.mxu1 %v1057_v37  ;;  %p891_p6 = pnand (%p432_p1), %p890_p5, %p884_p2 }
 0x149   : > { %474 = vmatprep.subr.mxu0 %v1043_v30  ;;  %759 = vmatprep.subr.mxu1 %v933_v57 }
 0x14a   : > { %475 = vmatpush1.msra.mxu0 %v1041_v29  ;;  %760 = vmatpush3.msra.mxu1 %v1051_v34 }
 0x14b   : > { %476 = vmatprep.subr.mxu0 %v1037_v27  ;;  %761 = vmatprep.subr.mxu1 %v933_v57 }
 0x14c   : > { %477 = vmatpush1.msra.mxu0 %v1035_v26  ;;  %762 = vmatpush3.msra.mxu1 %v1045_v31 }
 0x14d   : > { %478 = vmatprep.subr.mxu0 %v1031_v24  ;;  %763 = vmatprep.subr.mxu1 %v933_v57 }
 0x14e   : > { %479 = vmatpush1.msra.mxu0 %v1029_v23  ;;  %764 = vmatpush3.msra.mxu1 %v1039_v28 }
 0x14f   : > { %480 = vmatprep.subr.mxu0 %v1025_v21  ;;  %765 = vmatprep.subr.mxu1 %v933_v57 }
 0x150   : > { %481 = vmatpush1.msra.mxu0 %v1023_v20  ;;  %766 = vmatpush3.msra.mxu1 %v1033_v25 }
 0x151   : > { %482 = vmatprep.subr.mxu0 %v1019_v18  ;;  %767 = vmatprep.subr.mxu1 %v933_v57 }
 0x152   : > { %483 = vmatpush1.msra.mxu0 %v1017_v17  ;;  %768 = vmatpush3.msra.mxu1 %v1027_v22 }
 0x153   : > { %484 = vmatprep.subr.mxu0 %v1013_v15  ;;  %769 = vmatprep.subr.mxu1 %v933_v57 }
 0x154   : > { %485 = vmatpush1.msra.mxu0 %v1011_v14  ;;  %770 = vmatpush3.msra.mxu1 %v1021_v19 }
 0x155   : > { %486 = vmatprep.subr.mxu0 %v1007_v12  ;;  %771 = vmatprep.subr.mxu1 %v933_v57 }
 0x156   : > { %487 = vmatpush1.msra.mxu0 %v1005_v11  ;;  %772 = vmatpush3.msra.mxu1 %v1015_v16 }
 0x157   : > { %488 = vmatprep.subr.mxu0 %v1001_v9  ;;  %773 = vmatprep.subr.mxu1 %v933_v57 }
 0x158   : > { %489 = vmatpush1.msra.mxu0 %v1255_v8  ;;  %774 = vmatpush3.msra.mxu1 %v1009_v13 }
 0x159   : > { %490 = vmatprep.subr.mxu0 %v1256_v6  ;;  %775 = vmatprep.subr.mxu1 %v933_v57 }
 0x15a   : > { %491 = vmatpush1.msra.mxu0 %v1257_v5  ;;  %776 = vmatpush3.msra.mxu1 %v1003_v10 }
 0x15b   : > { %492 = vmatprep.subr.mxu0 %v1259_v3  ;;  %777 = vmatprep.subr.mxu1 %v933_v57 }
 0x15c   : > { %493 = vmatpush1.msra.mxu0 %v1260_v54  ;;  %778 = vmatpush3.msra.mxu1 %v1261_v52 }
 0x15d   : > { %527 = vmatmul.mubr.f32.vlgmr.msra.gmra.mxu0 %v919_v51  ;;  %779 = vmatprep.subr.mxu1 %v933_v57 }
 0x15e   : > { %780 = vmatpush3.msra.mxu1 %v1262_v53  ;;  %781 = vmatprep.mubr.msk.f32.mxu1 %vm935_vm1, %v933_v57 }
 0x15f   : > { %782 = vmatmul.mubr.f32.vlgmr.msra.gmra.mxu1 %v919_v51  ;;  %812 = vset.pattern.permute.xlu0 %v934_v55 }
 0x160   : > { %628 = vperm.xlu0 %812, %v626_v50   ;;  %v444_v50 = vld [vmem:[%s442_s20 + $0x8] sm:$0xff] }
 0x21d   : > { %v528_v0 = vpop.f32.mrf.mxu0 }
 0x21e   : > { %v529_v59 = vadd.f32 %v528_v0, %v450_v56  ;;  %v1267_v56 = vsub.s32 2, %v1263_v4 }
 0x21f   : > { %v530_v62 = vpop.f32.mrf.mxu0  ;;  %v599_v57 = vpop.f32.mrf.mxu1 }
 0x220   : > { %v603_v58 = vadd.f32 %v529_v59, %v443_v60  ;;  %v531_v55 = vadd.f32 %v530_v62, %v454_v61  ;;  %v458_v0 = vrot.slane %v1265_v2, %v1267_v56  ;;  %v445_v60 = vld [vmem:[%s442_s20 + $0x10] sm:$0xff] }
 0x221   : > { %v783_v54 = vpop.f32.mrf.mxu1 }
 0x222   : > { %v661_v52 = vmul.f32 -1.442695, %v603_v58  ;;  %v610_v53 = vadd.f32 %v531_v55, %v444_v50  ;;  %v600_v6 = vadd.f32 %v599_v57, %v458_v0  ;;  %v629_v58 = vpop.permute.xlu0 %628 }
 0x223   : > { %vm630_vm2 = vcmp.eq.s32.totalorder %v629_v58, 1 }
 0x224   : > { %813 = vpow2.f32 %v661_v52  ;;  %v662_v1 = vmul.f32 -1.442695, %v610_v53 }
 0x226   : > { %815 = vpow2.f32 %v662_v1 }
 0x231   : > { %v814_v7 = vpop.eup %813 }
 0x232   : > { %v607_v3 = vadd.f32 1.0, %v814_v7 }
 0x233   : > { %v816_v5 = vpop.eup %815 }
 0x234   : > { %817 = vrcp.f32 %v607_v3  ;;  %v614_v63 = vadd.f32 1.0, %v816_v5 }
 0x236   : > { %819 = vrcp.f32 %v614_v63 }
 0x241   : > { %v818_v8 = vpop.eup %817 }
 0x242   : > { %v617_v59 = vmul.f32 %v818_v8, %v600_v6 }
 0x243   : > { %v820_v62 = vpop.eup %819 }
 0x244   : > { %v618_v61 = vadd.f32 %v617_v59, %v445_v60  ;;  %v620_v54 = vsub.f32 1.0, %v820_v62  ;;  %v622_v3 = vmul.f32 %v919_v51, %v820_v62 }
 0x246   : > { %821 = vtanh.f32 %v618_v61 }
 0x253   : > { %v822_v1 = vpop.eup %821 }
 0x254   : > { %v621_v52 = vmul.f32 %v822_v1, %v620_v54 }
 0x255   :  { %434 = sbr.rel (!%p432_p1) target bundleno = 317 (0x13d), region = 64 }
 0x256   : > { %v623_v55 = vadd.f32 %v622_v3, %v621_v52 }
 0x258   : > { %v631_v50 = vsel %vm630_vm2, %v623_v55, %v919_v51  }
 0x259   : > { %v1268_v51 = vmov %v631_v50  ;;  %632 = vst [vmem:[#allocation9] sm:$0xff] (%p432_p1), %v631_v50 }
 0x25a   :  { %894 = shalt.err (!%p891_p6)
}
 0x25b   :  { %642 = dma.vmem_to_hbm [thread:$0]  %s640_s22, 128, %s1235_s6, [#allocation5]  }
 0x25c   :  { %915 = dma.done.wait [#allocation5], 128  }
 0x25d   :  { %916 = vsyncadd [#allocation5], 4294967168 }
 0x25e   :  { %646 = vsyncpa [#allocation4], 1 }
 0x25f   :  { %647 = vsyncpa [#allocation7], 1 }
 0x260   :  { %648 = vsyncpa [#allocation5], 1 }

</bundles_post_ra>
